<compile_context>
chip_gen: v6e
topology: v6e:2x2x1
jax: 0.10.0
libtpu: 0.0.40
codegen_flags: <defaults>
</compile_context>

<pallas_src>
import functools

import jax
import jax.numpy as jnp
from jax.experimental import pallas as pl
from jax.experimental.pallas import tpu as pltpu


def _round_up(x, m):
    return (x + m - 1) // m * m


def _fused_embed_kernel(x_ref, w1_ref, b1_ref, pool_ref, wc_ref, bc_ref,
                        out_ref, *, emb_width):
    """Batched embedding + fused TripletLoss sigmoid.

    Block shapes (TN samples per grid step):
      x_ref    : (TN*L, C)    flattened NLC rows for TN samples
      w1_ref   : (C, H)       b1_ref : (1, H)
      pool_ref : (TN, TN*L)   block-diagonal mean-pool matrix (1/L entries)
      wc_ref   : (H, WPAD)    concat(W2, W3) zero-padded to 128 lanes
      bc_ref   : (1, WPAD)    concat(b2, b3) zero-padded
      out_ref  : (TN, WPAD)   cols [0:E)   -> sigmoid(emb)  ('orig')
                              cols [E:E+K) -> o (aux head, no sigmoid)
    """
    # Pointwise conv over channels as one MXU matmul + ReLU on the VPU.
    h = jnp.dot(x_ref[...], w1_ref[...], preferred_element_type=jnp.float32)
    h = jnp.maximum(h + b1_ref[...], 0.0)                       # (TN*L, H)

    # Per-sample global mean pool as a second MXU matmul (keeps the reduction
    # off the XLU and chains straight into the head matmul).
    pooled = jnp.dot(pool_ref[...], h,
                     preferred_element_type=jnp.float32)        # (TN, H)

    # Both heads fused into a single lane-dense matmul.
    head = jnp.dot(pooled, wc_ref[...],
                   preferred_element_type=jnp.float32)
    head = head + bc_ref[...]                                   # (TN, WPAD)

    # TripletLoss activation (Sigmoid, EUP) only on the embedding lanes; the
    # aux output lanes pass through.  Single unmasked lane-dense store.
    lane = jax.lax.broadcasted_iota(jnp.int32, head.shape, 1)
    out_ref[...] = jnp.where(lane < emb_width,
                             jax.nn.sigmoid(head),
                             head).astype(out_ref.dtype)


def _embed_pallas(x_ncl, params, *, samples_per_block=8):
    """Embedding model + sigmoid for a (B, C, L) batch in ONE pallas_call.

    Returns (o, emb_sig): o is (B, K) without sigmoid, emb_sig is (B, E)
    with the TripletLoss sigmoid already applied.
    """
    w1, b1, w2, b2, w3, b3 = params
    B, C, L = x_ncl.shape
    H = w1.shape[1]
    E = w2.shape[1]
    K = w3.shape[1]
    WPAD = _round_up(max(E + K, 128), 128)          # lane-dense output width

    tn = samples_per_block
    NB = _round_up(max(B, tn), tn)                  # pad batch to multiple of TN
    if NB != B:
        x_ncl = jnp.pad(x_ncl, ((0, NB - B), (0, 0), (0, 0)))

    # One NCL -> NLC transpose for the whole stacked batch, then flatten to a
    # 2-D sample-major / length-minor slab so the kernel sees (TN*L, C) tiles.
    x = jnp.transpose(x_ncl, (0, 2, 1)).reshape(NB * L, C).astype(jnp.float32)
    # TODO(synk): on v6e/v7x, cast x / w1 to bf16 here (keep f32 accumulation)
    # to halve the input HBM bytes; kept f32 so numerics match all generations.

    # Fused head weights, zero-padded to WPAD lanes:
    #   cols [0:E) -> embedding head ('orig'), cols [E:E+K) -> aux output.
    wc = jnp.zeros((H, WPAD), jnp.float32)
    wc = wc.at[:, :E].set(w2).at[:, E:E + K].set(w3)
    bc = jnp.zeros((1, WPAD), jnp.float32)
    bc = bc.at[:, :E].set(b2).at[:, E:E + K].set(b3)

    # Block-diagonal mean-pool operator: pool[i, i*L:(i+1)*L] = 1/L.
    rows = jnp.arange(tn, dtype=jnp.int32)[:, None]
    cols = jnp.arange(tn * L, dtype=jnp.int32)[None, :]
    pool = jnp.where(cols // L == rows, 1.0 / L, 0.0).astype(jnp.float32)

    flops = 2 * NB * L * C * H + 2 * NB * L * H + 2 * NB * H * WPAD
    bytes_accessed = 4 * (x.size + w1.size + b1.size + pool.size
                          + wc.size + bc.size + NB * WPAD)
    cost = pl.CostEstimate(flops=flops,
                           transcendentals=NB * WPAD,
                           bytes_accessed=bytes_accessed)

    full = lambda shape: pl.BlockSpec(shape, lambda i: (0, 0))

    out = pl.pallas_call(
        functools.partial(_fused_embed_kernel, emb_width=E),
        out_shape=jax.ShapeDtypeStruct((NB, WPAD), jnp.float32),
        grid_spec=pltpu.PrefetchScalarGridSpec(
            num_scalar_prefetch=0,
            grid=(NB // tn,),
            in_specs=[
                pl.BlockSpec((tn * L, C), lambda i: (i, 0)),   # TN samples
                full((C, H)),
                full((1, H)),
                full((tn, tn * L)),
                full((H, WPAD)),
                full((1, WPAD)),
            ],
            out_specs=pl.BlockSpec((tn, WPAD), lambda i: (i, 0)),
        ),
        compiler_params=pltpu.CompilerParams(
            dimension_semantics=("parallel",),
            vmem_limit_bytes=32 * 1024 * 1024),
        cost_estimate=cost,
    )(x, w1, b1, pool, wc, bc)

    emb_sig = out[:B, :E]          # sigmoid already applied in-kernel
    o = out[:B, E:E + K]           # no sigmoid (matches the PyTorch module)
    return o, emb_sig


def triplet_loss_forward(inputs, positive, negative, params,
                         need_triplet_emb=True, samples_per_block=8):
    """Mirror of TripletLoss.forward.  Inputs have dimension (N, C_in, L_in)."""
    N = inputs.shape[0]
    if need_triplet_emb:
        # Anchor / positive / negative fused into one pallas_call.
        stacked = jnp.concatenate([inputs, positive, negative], axis=0)
        o_all, emb_all = _embed_pallas(stacked, params,
                                       samples_per_block=samples_per_block)
        last = emb_all[:N]
        plast = emb_all[N:2 * N]
        nlast = emb_all[2 * N:3 * N]
        # NOTE: matching PyTorch, `o` is reassigned by each embedding pass, so
        # the returned `o` comes from the LAST (negative) pass.  Do not "fix".
        o = o_all[2 * N:3 * N]
    else:
        o, last = _embed_pallas(inputs, params,
                                samples_per_block=samples_per_block)
        plast = None
        nlast = None
    return o, {'orig': last, 'pos': plast, 'neg': nlast}


def init_params(key, c_in=4, hidden=32, emb=16, n_classes=8):
    """Deterministic synthetic parameters for the embedding model."""
    k1, k2, k3 = jax.random.split(key, 3)
    w1 = jax.random.normal(k1, (c_in, hidden), jnp.float32) * 0.1
    b1 = jnp.zeros((1, hidden), jnp.float32)
    w2 = jax.random.normal(k2, (hidden, emb), jnp.float32) * 0.1
    b2 = jnp.zeros((1, emb), jnp.float32)
    w3 = jax.random.normal(k3, (hidden, n_classes), jnp.float32) * 0.1
    b3 = jnp.zeros((1, n_classes), jnp.float32)
    return (w1, b1, w2, b2, w3, b3)


def _embed_ref(x_ncl, params):
    """Pure-JAX reference of the synthetic embedding model + sigmoid."""
    w1, b1, w2, b2, w3, b3 = params
    x = jnp.transpose(x_ncl, (0, 2, 1)).astype(jnp.float32)     # (N, L, C)
    h = jnp.maximum(jnp.einsum('nlc,ch->nlh', x, w1) + b1, 0.0)
    pooled = jnp.mean(h, axis=1)                                 # (N, H)
    emb = pooled @ w2 + b2
    o = pooled @ w3 + b3
    return o, jax.nn.sigmoid(emb)


if __name__ == "__main__":
    key = jax.random.PRNGKey(0)
    kx, kp, kn, kw = jax.random.split(key, 4)

    N, C_IN, L_IN = 2, 4, 16          # (N, C_in, L_in) as in the docstring
    inputs = jax.random.normal(kx, (N, C_IN, L_IN), jnp.float32)
    positive = jax.random.normal(kp, (N, C_IN, L_IN), jnp.float32)
    negative = jax.random.normal(kn, (N, C_IN, L_IN), jnp.float32)

    params = init_params(kw, c_in=C_IN, hidden=32, emb=16, n_classes=8)

    fwd = jax.jit(triplet_loss_forward,
                  static_argnames=('need_triplet_emb', 'samples_per_block'))
    o, emb_dict = fwd(inputs, positive, negative, params,
                      need_triplet_emb=True)
    jax.block_until_ready(o)
    jax.block_until_ready(emb_dict['orig'])
    jax.block_until_ready(emb_dict['pos'])
    jax.block_until_ready(emb_dict['neg'])

    assert o.shape == (N, 8)
    assert emb_dict['orig'].shape == (N, 16)
    assert bool(jnp.all((emb_dict['orig'] >= 0) & (emb_dict['orig'] <= 1)))

    # Correctness vs. plain-JAX reference (o comes from the negative pass).
    _, last_ref = _embed_ref(inputs, params)
    _, plast_ref = _embed_ref(positive, params)
    o_ref, nlast_ref = _embed_ref(negative, params)
    assert bool(jnp.allclose(emb_dict['orig'], last_ref, atol=1e-2, rtol=1e-2))
    assert bool(jnp.allclose(emb_dict['pos'], plast_ref, atol=1e-2, rtol=1e-2))
    assert bool(jnp.allclose(emb_dict['neg'], nlast_ref, atol=1e-2, rtol=1e-2))
    assert bool(jnp.allclose(o, o_ref, atol=1e-2, rtol=1e-2))

    print("KERNEL_OK")
</pallas_src>

<mosaic_0001>
module attributes {stable_mosaic.version = 11 : i64} {
  func.func @_fused_embed_kernel(%arg0: i32, %arg1: memref<128x4xf32, #tpu.memory_space<vmem>>, %arg2: memref<4x32xf32, #tpu.memory_space<vmem>>, %arg3: memref<1x32xf32, #tpu.memory_space<vmem>>, %arg4: memref<8x128xf32, #tpu.memory_space<vmem>>, %arg5: memref<32x128xf32, #tpu.memory_space<vmem>>, %arg6: memref<1x128xf32, #tpu.memory_space<vmem>>, %arg7: memref<8x128xf32, #tpu.memory_space<vmem>>) attributes {dimension_semantics = [#tpu.dimension_semantics<parallel>], iteration_bounds = array<i64: 1>, scalar_prefetch = 0 : i64, scratch_operands = 0 : i64, tpu.core_type = #tpu.core_type<tc>, window_params = [{transform_indices = @transform_0, window_bounds = array<i64: 128, 4>}, {pipeline_mode = #tpu.pipeline_mode<synchronous>, transform_indices = @transform_1, window_bounds = array<i64: 4, 32>}, {pipeline_mode = #tpu.pipeline_mode<synchronous>, transform_indices = @transform_2, window_bounds = array<i64: 1, 32>}, {pipeline_mode = #tpu.pipeline_mode<synchronous>, transform_indices = @transform_3, window_bounds = array<i64: 8, 128>}, {pipeline_mode = #tpu.pipeline_mode<synchronous>, transform_indices = @transform_4, window_bounds = array<i64: 32, 128>}, {pipeline_mode = #tpu.pipeline_mode<synchronous>, transform_indices = @transform_5, window_bounds = array<i64: 1, 128>}, {transform_indices = @transform_6, window_bounds = array<i64: 8, 128>}]} {
    %c0 = arith.constant 0 : index
    %c0_0 = arith.constant 0 : index
    %0 = vector.load %arg1[%c0, %c0_0] : memref<128x4xf32, #tpu.memory_space<vmem>>, vector<128x4xf32>
    %c0_1 = arith.constant 0 : index
    %c0_2 = arith.constant 0 : index
    %1 = vector.load %arg2[%c0_1, %c0_2] : memref<4x32xf32, #tpu.memory_space<vmem>>, vector<4x32xf32>
    %cst = arith.constant dense<0.000000e+00> : vector<128x32xf32>
    %2 = tpu.matmul %0, %1, %cst {dimension_numbers = #tpu.dot_dimension_numbers<[1], [0], [0], [1], [0, 0, 1, 1], [], []>} : vector<128x4xf32>, vector<4x32xf32>, vector<128x32xf32> -> vector<128x32xf32>
    %c0_3 = arith.constant 0 : index
    %c0_4 = arith.constant 0 : index
    %3 = vector.load %arg3[%c0_3, %c0_4] : memref<1x32xf32, #tpu.memory_space<vmem>>, vector<1x32xf32>
    %4 = vector.broadcast %3 : vector<1x32xf32> to vector<128x32xf32>
    %5 = arith.addf %2, %4 : vector<128x32xf32>
    %cst_5 = arith.constant 0.000000e+00 : f32
    %6 = vector.broadcast %cst_5 : f32 to vector<128x32xf32>
    %7 = arith.maximumf %5, %6 : vector<128x32xf32>
    %c0_6 = arith.constant 0 : index
    %c0_7 = arith.constant 0 : index
    %8 = vector.load %arg4[%c0_6, %c0_7] : memref<8x128xf32, #tpu.memory_space<vmem>>, vector<8x128xf32>
    %cst_8 = arith.constant dense<0.000000e+00> : vector<8x32xf32>
    %9 = tpu.matmul %8, %7, %cst_8 {dimension_numbers = #tpu.dot_dimension_numbers<[1], [0], [0], [1], [0, 0, 1, 1], [], []>} : vector<8x128xf32>, vector<128x32xf32>, vector<8x32xf32> -> vector<8x32xf32>
    %c0_9 = arith.constant 0 : index
    %c0_10 = arith.constant 0 : index
    %10 = vector.load %arg5[%c0_9, %c0_10] : memref<32x128xf32, #tpu.memory_space<vmem>>, vector<32x128xf32>
    %cst_11 = arith.constant dense<0.000000e+00> : vector<8x128xf32>
    %11 = tpu.matmul %9, %10, %cst_11 {dimension_numbers = #tpu.dot_dimension_numbers<[1], [0], [0], [1], [0, 0, 1, 1], [], []>} : vector<8x32xf32>, vector<32x128xf32>, vector<8x128xf32> -> vector<8x128xf32>
    %c0_12 = arith.constant 0 : index
    %c0_13 = arith.constant 0 : index
    %12 = vector.load %arg6[%c0_12, %c0_13] : memref<1x128xf32, #tpu.memory_space<vmem>>, vector<1x128xf32>
    %13 = vector.broadcast %12 : vector<1x128xf32> to vector<8x128xf32>
    %14 = arith.addf %11, %13 : vector<8x128xf32>
    %15 = tpu.iota {dimensions = array<i32: 1>} : vector<8x128xi32>
    %c16_i32 = arith.constant 16 : i32
    %16 = vector.broadcast %c16_i32 : i32 to vector<8x128xi32>
    %17 = arith.cmpi slt, %15, %16 : vector<8x128xi32>
    %18 = arith.negf %14 : vector<8x128xf32>
    %19 = math.exp %18 : vector<8x128xf32>
    %cst_14 = arith.constant 1.000000e+00 : f32
    %20 = vector.broadcast %cst_14 : f32 to vector<8x128xf32>
    %21 = arith.addf %20, %19 : vector<8x128xf32>
    %22 = arith.divf %20, %21 : vector<8x128xf32>
    %23 = arith.select %17, %22, %14 : vector<8x128xi1>, vector<8x128xf32>
    %c0_15 = arith.constant 0 : index
    %c0_16 = arith.constant 0 : index
    %24 = vector.load %arg7[%c0_15, %c0_16] : memref<8x128xf32, #tpu.memory_space<vmem>>, vector<8x128xf32>
    tpu.vector_store %arg7[%c0_15, %c0_16], %23 {strides = array<i32>} : memref<8x128xf32, #tpu.memory_space<vmem>>, vector<8x128xf32>,
    return
  }
  func.func @transform_0(%arg0: i32) -> (i32, i32) {
    %c0_i32 = arith.constant 0 : i32
    %c0_i32_0 = arith.constant 0 : i32
    return %arg0, %c0_i32 : i32, i32
  }
  func.func @transform_1(%arg0: i32) -> (i32, i32) {
    %c0_i32 = arith.constant 0 : i32
    %c0_i32_0 = arith.constant 0 : i32
    %c0_i32_1 = arith.constant 0 : i32
    return %c0_i32, %c0_i32_0 : i32, i32
  }
  func.func @transform_2(%arg0: i32) -> (i32, i32) {
    %c0_i32 = arith.constant 0 : i32
    %c0_i32_0 = arith.constant 0 : i32
    %c0_i32_1 = arith.constant 0 : i32
    return %c0_i32, %c0_i32_0 : i32, i32
  }
  func.func @transform_3(%arg0: i32) -> (i32, i32) {
    %c0_i32 = arith.constant 0 : i32
    %c0_i32_0 = arith.constant 0 : i32
    %c0_i32_1 = arith.constant 0 : i32
    return %c0_i32, %c0_i32_0 : i32, i32
  }
  func.func @transform_4(%arg0: i32) -> (i32, i32) {
    %c0_i32 = arith.constant 0 : i32
    %c0_i32_0 = arith.constant 0 : i32
    %c0_i32_1 = arith.constant 0 : i32
    return %c0_i32, %c0_i32_0 : i32, i32
  }
  func.func @transform_5(%arg0: i32) -> (i32, i32) {
    %c0_i32 = arith.constant 0 : i32
    %c0_i32_0 = arith.constant 0 : i32
    %c0_i32_1 = arith.constant 0 : i32
    return %c0_i32, %c0_i32_0 : i32, i32
  }
  func.func @transform_6(%arg0: i32) -> (i32, i32) {
    %c0_i32 = arith.constant 0 : i32
    %c0_i32_0 = arith.constant 0 : i32
    return %arg0, %c0_i32 : i32, i32
  }
}

</mosaic_0001>

<bundles_post_ra>
// kernel: triplet_loss_forward.1
= control target key start
LH: loop header
LB: loop body
LE: loop exit
PB: predicated region body
PF: predicated region fallthrough
CT: control target
= control target key end

     0   :  { %vm96_vm0 = vcmask 1043456   ;;  %vm47_vm1 = vcmask 31744   ;;  %v570_v17 = vmov 0.0   ;;  %vm571_vm2 = vmmov 0   ;;  %s726_s1 = inlined_call_operand.vmem [shape: f32[4,32], index: 1, kind: input, shape index: {}]   ;;  %s727_s0 = inlined_call_operand.vmem [shape: f32[128,4], index: 0, kind: input, shape index: {}]   ;;  %s728_s4 = inlined_call_operand.vmem [shape: f32[32,128], index: 4, kind: input, shape index: {}]   ;;  %s729_s2 = inlined_call_operand.vmem [shape: f32[1,32], index: 2, kind: input, shape index: {}]   ;;  %s730_s3 = inlined_call_operand.vmem [shape: f32[8,128], index: 3, kind: input, shape index: {}]   ;;  %s731_s5 = inlined_call_operand.vmem [shape: f32[1,128], index: 5, kind: input, shape index: {}]   ;;  %s732_s6 = inlined_call_operand.vmem [shape: f32[8,128], index: 6, kind: output, shape index: {}]  }
   0x1   :  { %v39_v0 = vld [vmem:[%s726_s1] sm:$0xf]  ;;  %v24_v2 = vld [vmem:[%s727_s0 + $0x8] sm:$0xff]  ;;  %v25_v3 = vld [vmem:[%s727_s0 + $0x10] sm:$0xff]  ;;  %518 = vmatprep.subr.mxu1 %v570_v17  ;;  %550 = vmatprep.mubr.msk.f32.mxu1 %vm571_vm2, %v570_v17  ;;  %vm343_vm3 = vcmask 261120  }
   0x2   :  { %v23_v1 = vld [vmem:[%s727_s0] sm:$0xff]  ;;  %492 = vmatprep.subr.msk.mxu0 %vm96_vm0, %v39_v0  ;;  %v26_v4 = vld [vmem:[%s727_s0 + $0x18] sm:$0xff]  ;;  %v28_v6 = vld [vmem:[%s727_s0 + $0x28] sm:$0xff] }
   0x3   :  { %494 = vmatprep.mubr.msk.f32.mxu0 %vm47_vm1, %v23_v1  ;;  %493 = vmatpush3.msk.msra.mxu0 %vm96_vm0, %v39_v0  ;;  %v27_v5 = vld [vmem:[%s727_s0 + $0x20] sm:$0xff]  ;;  %v29_v7 = vld [vmem:[%s727_s0 + $0x30] sm:$0xff]  ;;  %v30_v8 = vld [vmem:[%s727_s0 + $0x38] sm:$0xff] }
   0x4   :  { %495 = vmatmul.mubr.msk.f32.vlgmr.msra.gmra.mxu0 %vm47_vm1, %v24_v2  ;;  %v31_v9 = vld [vmem:[%s727_s0 + $0x40] sm:$0xff]  ;;  %v32_v10 = vld [vmem:[%s727_s0 + $0x48] sm:$0xff]  ;;  %v33_v11 = vld [vmem:[%s727_s0 + $0x50] sm:$0xff]  ;;  %553 = vmatprep.subr.mxu0 %v570_v17 }
   0x5   :  { %497 = vmatprep.mubr.msk.f32.mxu0 %vm47_vm1, %v25_v3  ;;  %v34_v12 = vld [vmem:[%s727_s0 + $0x58] sm:$0xff]  ;;  %v35_v13 = vld [vmem:[%s727_s0 + $0x60] sm:$0xff]  ;;  %v36_v14 = vld [vmem:[%s727_s0 + $0x68] sm:$0xff] }
   0x6   :  { %v37_v15 = vld [vmem:[%s727_s0 + $0x70] sm:$0xff]  ;;  %v38_v16 = vld [vmem:[%s727_s0 + $0x78] sm:$0xff]  ;;  %v333_v20 = vld [vmem:[%s728_s4 + $0x8] sm:$0xff] }
   0x7   :  { %v335_v18 = vld [vmem:[%s728_s4 + $0x18] sm:$0xff]  ;;  %v334_v19 = vld [vmem:[%s728_s4 + $0x10] sm:$0xff]  ;;  %v332_v21 = vld [vmem:[%s728_s4] sm:$0xff] }
   0x8   :  { %498 = vmatmul.mubr.msk.f32.gmra.mxu0 %vm47_vm1, %v26_v4  ;;  %v432_v36 = vld [vmem:[%s729_s2] ss:$0 sm:$0xff] }
   0x9   :  { %500 = vmatprep.mubr.msk.f32.mxu0 %vm47_vm1, %v27_v5  ;;  %554 = vmatpush3.msra.mxu0 %v335_v18  ;;  %v417_v18 = vlaneseq }
   0xa   :  { %555 = vmatprep.subr.mxu0 %v570_v17 }
   0xb   :  { %556 = vmatpush3.msra.mxu0 %v334_v19 }
   0xc   :  { %501 = vmatmul.mubr.msk.f32.gmra.mxu0 %vm47_vm1, %v28_v6  ;;  %557 = vmatprep.subr.mxu0 %v570_v17 }
   0xd   :  { %503 = vmatprep.mubr.msk.f32.mxu0 %vm47_vm1, %v29_v7  ;;  %558 = vmatpush3.msra.mxu0 %v333_v20  ;;  %v261_v7 = vld [vmem:[%s730_s3] sm:$0xff] }
   0xe   :  { %559 = vmatprep.subr.mxu0 %v570_v17 }
   0xf   :  { %560 = vmatpush3.msra.mxu0 %v332_v21 }
  0x10   :  { %504 = vmatmul.mubr.msk.f32.gmra.mxu0 %vm47_vm1, %v30_v8 }
  0x11   :  { %506 = vmatprep.mubr.msk.f32.mxu0 %vm47_vm1, %v31_v9 }
  0x14   :  { %507 = vmatmul.mubr.msk.f32.gmra.mxu0 %vm47_vm1, %v32_v10  ;;  %v450_v10 = vld [vmem:[%s731_s5] ss:$0 sm:$0xff] }
  0x15   :  { %509 = vmatprep.mubr.msk.f32.mxu0 %vm47_vm1, %v33_v11 }
  0x18   :  { %510 = vmatmul.mubr.msk.f32.gmra.mxu0 %vm47_vm1, %v34_v12 }
  0x19   :  { %512 = vmatprep.mubr.msk.f32.mxu0 %vm47_vm1, %v35_v13 }
  0x1c   :  { %513 = vmatmul.mubr.msk.f32.gmra.mxu0 %vm47_vm1, %v36_v14 }
  0x1d   :  { %515 = vmatprep.mubr.msk.f32.mxu0 %vm47_vm1, %v37_v15 }
  0x20   :  { %516 = vmatmul.mubr.msk.f32.gmra.mxu0 %vm47_vm1, %v38_v16 }
  0x21   :  { %561 = vmatprep.mubr.msk.f32.mxu0 %vm571_vm2, %v570_v17 }
  0xc4   :  { %v693_v22 = vpop.f32.mrf.mxu0 }
  0xc5   :  { %v172_v1 = vadd.f32 %v693_v22, %v432_v36 }
  0xc6   :  { %v695_v23 = vpop.f32.mrf.mxu0 }
  0xc7   :  { %v167_v3 = vadd.f32 %v432_v36, %v695_v23  ;;  %v246_v5 = vmax.f32 %v172_v1, 0.0 }
  0xc8   :  { %v499_v24 = vpop.f32.mrf.mxu0 }
  0xc9   :  { %v182_v61 = vadd.f32 %v499_v24, %v432_v36  ;;  %v245_v6 = vmax.f32 %v167_v3, 0.0 }
  0xca   :  { %v176_v25 = vpop.f32.mrf.mxu0 }
  0xcb   :  { %v177_v63 = vadd.f32 %v432_v36, %v176_v25  ;;  %v248_v2 = vmax.f32 %v182_v61, 0.0 }
  0xcc   :  { %v502_v26 = vpop.f32.mrf.mxu0 }
  0xcd   :  { %v192_v57 = vadd.f32 %v502_v26, %v432_v36  ;;  %v247_v4 = vmax.f32 %v177_v63, 0.0 }
  0xce   :  { %v186_v27 = vpop.f32.mrf.mxu0 }
  0xcf   :  { %v187_v59 = vadd.f32 %v432_v36, %v186_v27  ;;  %v250_v62 = vmax.f32 %v192_v57, 0.0 }
  0xd0   :  { %v505_v28 = vpop.f32.mrf.mxu0 }
  0xd1   :  { %v202_v53 = vadd.f32 %v505_v28, %v432_v36  ;;  %v249_v0 = vmax.f32 %v187_v59, 0.0 }
  0xd2   :  { %v196_v29 = vpop.f32.mrf.mxu0 }
  0xd3   :  { %v197_v55 = vadd.f32 %v432_v36, %v196_v29  ;;  %v252_v58 = vmax.f32 %v202_v53, 0.0 }
  0xd4   :  { %v508_v30 = vpop.f32.mrf.mxu0 }
  0xd5   :  { %v212_v49 = vadd.f32 %v508_v30, %v432_v36  ;;  %v251_v60 = vmax.f32 %v197_v55, 0.0 }
  0xd6   :  { %v206_v31 = vpop.f32.mrf.mxu0 }
  0xd7   :  { %v207_v51 = vadd.f32 %v432_v36, %v206_v31  ;;  %v254_v54 = vmax.f32 %v212_v49, 0.0 }
  0xd8   :  { %v511_v32 = vpop.f32.mrf.mxu0 }
  0xd9   :  { %v222_v45 = vadd.f32 %v511_v32, %v432_v36  ;;  %v253_v56 = vmax.f32 %v207_v51, 0.0 }
  0xda   :  { %v216_v33 = vpop.f32.mrf.mxu0 }
  0xdb   :  { %v217_v47 = vadd.f32 %v432_v36, %v216_v33  ;;  %v256_v50 = vmax.f32 %v222_v45, 0.0 }
  0xdc   :  { %v514_v34 = vpop.f32.mrf.mxu0 }
  0xdd   :  { %v232_v40 = vadd.f32 %v514_v34, %v432_v36  ;;  %v255_v52 = vmax.f32 %v217_v47, 0.0 }
  0xde   :  { %v226_v35 = vpop.f32.mrf.mxu0 }
  0xdf   :  { %v227_v43 = vadd.f32 %v432_v36, %v226_v35  ;;  %v258_v46 = vmax.f32 %v232_v40, 0.0 }
  0xe0   :  { %v517_v37 = vpop.f32.mrf.mxu0 }
  0xe1   :  { %v242_v38 = vadd.f32 %v517_v37, %v432_v36  ;;  %v257_v48 = vmax.f32 %v227_v43, 0.0 }
  0xe2   :  { %v236_v39 = vpop.f32.mrf.mxu0 }
  0xe3   :  { %v260_v41 = vmax.f32 %v242_v38, 0.0  ;;  %v237_v42 = vadd.f32 %v432_v36, %v236_v39 }
  0xe5   :  { %v259_v44 = vmax.f32 %v237_v42, 0.0  ;;  %519 = vmatpush3.msra.mxu1 %v260_v41 }
  0xe6   :  { %520 = vmatprep.subr.mxu1 %v570_v17 }
  0xe7   :  { %521 = vmatpush3.msra.mxu1 %v259_v44 }
  0xe8   :  { %522 = vmatprep.subr.mxu1 %v570_v17 }
  0xe9   :  { %523 = vmatpush3.msra.mxu1 %v258_v46 }
  0xea   :  { %524 = vmatprep.subr.mxu1 %v570_v17 }
  0xeb   :  { %525 = vmatpush3.msra.mxu1 %v257_v48 }
  0xec   :  { %526 = vmatprep.subr.mxu1 %v570_v17 }
  0xed   :  { %527 = vmatpush3.msra.mxu1 %v256_v50 }
  0xee   :  { %528 = vmatprep.subr.mxu1 %v570_v17 }
  0xef   :  { %529 = vmatpush3.msra.mxu1 %v255_v52 }
  0xf0   :  { %530 = vmatprep.subr.mxu1 %v570_v17 }
  0xf1   :  { %531 = vmatpush3.msra.mxu1 %v254_v54 }
  0xf2   :  { %532 = vmatprep.subr.mxu1 %v570_v17 }
  0xf3   :  { %533 = vmatpush3.msra.mxu1 %v253_v56 }
  0xf4   :  { %534 = vmatprep.subr.mxu1 %v570_v17 }
  0xf5   :  { %535 = vmatpush3.msra.mxu1 %v252_v58 }
  0xf6   :  { %536 = vmatprep.subr.mxu1 %v570_v17 }
  0xf7   :  { %537 = vmatpush3.msra.mxu1 %v251_v60 }
  0xf8   :  { %538 = vmatprep.subr.mxu1 %v570_v17 }
  0xf9   :  { %539 = vmatpush3.msra.mxu1 %v250_v62 }
  0xfa   :  { %540 = vmatprep.subr.mxu1 %v570_v17 }
  0xfb   :  { %541 = vmatpush3.msra.mxu1 %v249_v0 }
  0xfc   :  { %542 = vmatprep.subr.mxu1 %v570_v17 }
  0xfd   :  { %543 = vmatpush3.msra.mxu1 %v248_v2 }
  0xfe   :  { %544 = vmatprep.subr.mxu1 %v570_v17 }
  0xff   :  { %545 = vmatpush3.msra.mxu1 %v247_v4 }
 0x100   :  { %546 = vmatprep.subr.mxu1 %v570_v17 }
 0x101   :  { %547 = vmatpush3.msra.mxu1 %v246_v5 }
 0x102   :  { %548 = vmatprep.subr.mxu1 %v570_v17  ;;  %v418_v17 = vand.u32 127, %v417_v18 }
 0x103   :  { %549 = vmatpush3.msra.mxu1 %v245_v6 }
 0x104   :  { %551 = vmatmul.mubr.f32.vlgmr.msra.gmra.mxu1 %v261_v7  ;;  %vm419_vm4 = vcmp.lt.s32.totalorder %v418_v17, 16 }
 0x1c4   :  { %v328_v8 = vpop.f32.mrf.mxu1 }
 0x1c5   :  { %562 = vmatmul.mubr.msk.f32.vlgmr.msra.gmra.mxu0 %vm343_vm3, %v328_v8 }
 0x1c6   :  { %v552_v9 = vpop.f32.mrf.mxu1 }
 0x285   :  { %v413_v11 = vpop.f32.mrf.mxu0 }
 0x286   :  { %v414_v12 = vadd.f32 %v450_v10, %v413_v11 }
 0x287   :  { %v563_v13 = vpop.f32.mrf.mxu0 }
 0x288   :  { %v452_v14 = vmul.f32 -1.442695, %v414_v12 }
 0x28a   :  { %566 = vpow2.f32 %v452_v14 }
 0x297   :  { %v567_v15 = vpop.eup %566 }
 0x298   :  { %v423_v16 = vadd.f32 1.0, %v567_v15 }
 0x29a   :  { %568 = vrcp.f32 %v423_v16 }
 0x2a7   :  { %v569_v19 = vpop.eup %568 }
 0x2a8   :  { %v426_v20 = vsel %vm419_vm4, %v569_v19, %v414_v12 }
 0x2a9   :  { %427 = vst [vmem:[%s732_s6] sm:$0xff] %v426_v20 }

</bundles_post_ra>
